<compile_context>
chip_gen: v5e
topology: v5e:2x2
jax: 0.10.0
libtpu: 0.0.40
codegen_flags: <defaults>
</compile_context>

<pallas_src>
import math

import jax
import jax.numpy as jnp
from jax.experimental import pallas as pl
from jax.experimental.pallas import tpu as pltpu

_SUBLANE = 8  # TPU sublane width (second-to-last dim)


def prepare_classifier_params(weight, bias):
    """One-time parameter prep (outside the forward hot path).

    Args:
      weight: (n_class, n_hid) float32, PyTorch nn.Linear layout.
      bias:   (n_class,) float32.
    Returns:
      w_t:   (n_hid, n_class) — MXU-native layout (contract sublane of w
             against lane of x, no in-kernel relayout).
      b_row: (1, n_class) — broadcastable bias row.
    """
    return weight.T, bias.reshape(1, -1)


def _classifier_kernel(x_ref, w_ref, b_ref, o_ref):
    # x_ref: (tm, n_hid), w_ref: (n_hid, n_class), b_ref: (1, n_class)
    acc = jnp.dot(x_ref[...], w_ref[...], preferred_element_type=jnp.float32)
    # f32 epilogue: broadcast bias row, cast only at the final store.
    o_ref[...] = (acc + b_ref[...]).astype(o_ref.dtype)


def hgnn_classifier_forward(x, w_t, b_row, *, block_m=8192):
    """Pallas implementation of HGNN_classifier.forward (y = x @ W.T + b).

    Args:
      x:      (batch, n_hid) float32.
      w_t:    (n_hid, n_class) float32, from prepare_classifier_params.
      b_row:  (1, n_class) float32, from prepare_classifier_params.
      block_m: max rows per batch tile (multiple of 8). Large enough that
               large batches stay off the per-grid-step overhead floor while
               the double-buffered tiles still fit VMEM comfortably (incl.
               v7x's 64 MiB).
    Returns:
      (batch, n_class) float32
    """
    batch, n_hid = x.shape
    n_hid_w, n_class = w_t.shape
    assert n_hid_w == n_hid
    assert block_m % _SUBLANE == 0

    # Tile the batch: full dim if it fits one tile (always a legal block
    # shape), else block_m (multiple of 8). The ragged final tile is handled
    # by Pallas masking — out-of-bounds output rows are discarded, and rows
    # are independent, so no correctness impact.
    tm = batch if batch <= block_m else block_m
    grid = (pl.cdiv(batch, tm),)

    itemsize = jnp.dtype(x.dtype).itemsize
    cost = pl.CostEstimate(
        flops=2 * batch * n_hid * n_class,
        transcendentals=0,
        bytes_accessed=(x.size + w_t.size + b_row.size + batch * n_class) * itemsize,
    )

    return pl.pallas_call(
        _classifier_kernel,
        out_shape=jax.ShapeDtypeStruct((batch, n_class), x.dtype),
        grid_spec=pltpu.PrefetchScalarGridSpec(
            num_scalar_prefetch=0,
            grid=grid,
            in_specs=[
                # x: one batch tile per grid step.
                pl.BlockSpec((tm, n_hid), lambda i: (i, 0)),
                # weight/bias: resident across the whole grid (same block every step).
                pl.BlockSpec((n_hid, n_class), lambda i: (0, 0)),
                pl.BlockSpec((1, n_class), lambda i: (0, 0)),
            ],
            out_specs=pl.BlockSpec((tm, n_class), lambda i: (i, 0)),
        ),
        compiler_params=pltpu.CompilerParams(
            # Batch tiles are independent -> parallel.
            dimension_semantics=("parallel",),
        ),
        cost_estimate=cost,
    )(x, w_t, b_row)


if __name__ == "__main__":
    # Small shapes consistent with the module: n_hid=32, n_class=8, batch=16.
    n_hid, n_class, batch = 32, 8, 16

    key = jax.random.PRNGKey(0)
    kx, kw, kb = jax.random.split(key, 3)

    # Deterministic init matching nn.Linear defaults:
    #   weight ~ U(-1/sqrt(n_hid), 1/sqrt(n_hid)), bias same bound.
    bound = 1.0 / math.sqrt(n_hid)
    weight = jax.random.uniform(
        kw, (n_class, n_hid), dtype=jnp.float32, minval=-bound, maxval=bound
    )
    bias = jax.random.uniform(
        kb, (n_class,), dtype=jnp.float32, minval=-bound, maxval=bound
    )
    x = jax.random.normal(kx, (batch, n_hid), dtype=jnp.float32)

    # One-time param prep (would live at module init in a real model).
    w_t, b_row = prepare_classifier_params(weight, bias)

    out = jax.block_until_ready(hgnn_classifier_forward(x, w_t, b_row))

    # Sanity check vs pure-JAX reference.
    ref = x @ weight.T + bias
    assert out.shape == (batch, n_class)
    assert jnp.allclose(out, ref, atol=1e-5, rtol=1e-5)

    # Exercise the multi-tile + ragged-final-tile path (batch not a multiple
    # of the tile size nor of 8), with a small tile to force several steps.
    batch2 = 1037
    x2 = jax.random.normal(jax.random.PRNGKey(1), (batch2, n_hid), dtype=jnp.float32)
    out2 = jax.block_until_ready(
        hgnn_classifier_forward(x2, w_t, b_row, block_m=256)
    )
    ref2 = x2 @ weight.T + bias
    assert out2.shape == (batch2, n_class)
    assert jnp.allclose(out2, ref2, atol=1e-5, rtol=1e-5)

    print("KERNEL_OK")
</pallas_src>

<mosaic_0001>
module attributes {stable_mosaic.version = 11 : i64} {
  func.func @_classifier_kernel(%arg0: i32, %arg1: memref<16x32xf32, #tpu.memory_space<vmem>>, %arg2: memref<32x8xf32, #tpu.memory_space<vmem>>, %arg3: memref<1x8xf32, #tpu.memory_space<vmem>>, %arg4: memref<16x8xf32, #tpu.memory_space<vmem>>) attributes {dimension_semantics = [#tpu.dimension_semantics<parallel>], iteration_bounds = array<i64: 1>, scalar_prefetch = 0 : i64, scratch_operands = 0 : i64, tpu.core_type = #tpu.core_type<tc>, window_params = [{transform_indices = @transform_0, window_bounds = array<i64: 16, 32>}, {pipeline_mode = #tpu.pipeline_mode<synchronous>, transform_indices = @transform_1, window_bounds = array<i64: 32, 8>}, {pipeline_mode = #tpu.pipeline_mode<synchronous>, transform_indices = @transform_2, window_bounds = array<i64: 1, 8>}, {transform_indices = @transform_3, window_bounds = array<i64: 16, 8>}]} {
    %c0 = arith.constant 0 : index
    %c0_0 = arith.constant 0 : index
    %0 = vector.load %arg1[%c0, %c0_0] : memref<16x32xf32, #tpu.memory_space<vmem>>, vector<16x32xf32>
    %c0_1 = arith.constant 0 : index
    %c0_2 = arith.constant 0 : index
    %1 = vector.load %arg2[%c0_1, %c0_2] : memref<32x8xf32, #tpu.memory_space<vmem>>, vector<32x8xf32>
    %cst = arith.constant dense<0.000000e+00> : vector<16x8xf32>
    %2 = tpu.matmul %0, %1, %cst {dimension_numbers = #tpu.dot_dimension_numbers<[1], [0], [0], [1], [0, 0, 1, 1], [], []>} : vector<16x32xf32>, vector<32x8xf32>, vector<16x8xf32> -> vector<16x8xf32>
    %c0_3 = arith.constant 0 : index
    %c0_4 = arith.constant 0 : index
    %3 = vector.load %arg3[%c0_3, %c0_4] : memref<1x8xf32, #tpu.memory_space<vmem>>, vector<1x8xf32>
    %4 = vector.broadcast %3 : vector<1x8xf32> to vector<16x8xf32>
    %5 = arith.addf %2, %4 : vector<16x8xf32>
    %c0_5 = arith.constant 0 : index
    %c0_6 = arith.constant 0 : index
    %6 = vector.load %arg4[%c0_5, %c0_6] : memref<16x8xf32, #tpu.memory_space<vmem>>, vector<16x8xf32>
    tpu.vector_store %arg4[%c0_5, %c0_6], %5 {strides = array<i32>} : memref<16x8xf32, #tpu.memory_space<vmem>>, vector<16x8xf32>,
    return
  }
  func.func @transform_0(%arg0: i32) -> (i32, i32) {
    %c0_i32 = arith.constant 0 : i32
    %c0_i32_0 = arith.constant 0 : i32
    return %arg0, %c0_i32 : i32, i32
  }
  func.func @transform_1(%arg0: i32) -> (i32, i32) {
    %c0_i32 = arith.constant 0 : i32
    %c0_i32_0 = arith.constant 0 : i32
    %c0_i32_1 = arith.constant 0 : i32
    return %c0_i32, %c0_i32_0 : i32, i32
  }
  func.func @transform_2(%arg0: i32) -> (i32, i32) {
    %c0_i32 = arith.constant 0 : i32
    %c0_i32_0 = arith.constant 0 : i32
    %c0_i32_1 = arith.constant 0 : i32
    return %c0_i32, %c0_i32_0 : i32, i32
  }
  func.func @transform_3(%arg0: i32) -> (i32, i32) {
    %c0_i32 = arith.constant 0 : i32
    %c0_i32_0 = arith.constant 0 : i32
    return %arg0, %c0_i32 : i32, i32
  }
}

</mosaic_0001>

<bundles_post_ra>
// kernel: tpu_custom_call.1
= control target key start
LH: loop header
LB: loop body
LE: loop exit
PB: predicated region body
PF: predicated region fallthrough
CT: control target
= control target key end

     0   :  { %vm24_vm0 = vcmask 261120   ;;  %vm54_vm1 = vcmask 64512   ;;  %s115_s1 = inlined_call_operand.vmem [shape: f32[32,8], index: 1, kind: input, shape index: {}]   ;;  %s116_s2 = inlined_call_operand.vmem [shape: f32[1,8], index: 2, kind: input, shape index: {}]   ;;  %s117_s0 = inlined_call_operand.vmem [shape: f32[16,32], index: 0, kind: input, shape index: {}]   ;;  %s118_s3 = inlined_call_operand.vmem [shape: f32[16,8], index: 3, kind: output, shape index: {}]  }
   0x1   :  { %v19_v0 = vld [vmem:[%s115_s1 + $0x18] sm:$0xff]  ;;  %v18_v1 = vld [vmem:[%s115_s1 + $0x10] sm:$0xff]  ;;  %v17_v2 = vld [vmem:[%s115_s1 + $0x8] sm:$0xff] }
   0x2   :  { %43 = vmatpush.msra.mxu0 %v19_v0  ;;  %63 = vmatpush.msra.mxu1 %v19_v0  ;;  %v16_v3 = vld [vmem:[%s115_s1] sm:$0xff]  ;;  %v15_v5 = vld [vmem:[%s117_s0 + $0x8] sm:$0xff] }
   0x3   :  { %v14_v4 = vld [vmem:[%s117_s0] sm:$0xff] }
   0x4   :  { %44 = vmatpush.msra.mxu0 %v18_v1  ;;  %64 = vmatpush.msra.mxu1 %v18_v1  ;;  %v67_v6 = vld [vmem:[%s116_s2] ss:$0 sm:$0xff] }
   0x6   :  { %45 = vmatpush.msra.mxu0 %v17_v2  ;;  %65 = vmatpush.msra.mxu1 %v17_v2 }
   0x8   :  { %46 = vmatpush.msra.mxu0 %v16_v3  ;;  %66 = vmatpush.msra.mxu1 %v16_v3 }
   0x9   :  { %61 = vmatmul.msk.f32.vlgmr.msra.gmra.mxu0 %vm24_vm0, %v14_v4  ;;  %62 = vmatmul.msk.f32.vlgmr.msra.gmra.mxu1 %vm24_vm0, %v15_v5 }
  0x86   :  { %v48_v7 = vpop.f32.mrf.mxu0  ;;  %v51_v8 = vpop.f32.mrf.mxu1 }
  0x87   :  { %v49_v9 = vadd.f32 %v67_v6, %v48_v7  ;;  %v52_v10 = vadd.f32 %v67_v6, %v51_v8 }
  0x89   :  { %55 = vst.msk [vmem:[%s118_s3] sm:$0xff] %vm54_vm1, %v49_v9 }
  0x8a   :  { %56 = vst.msk [vmem:[%s118_s3 + $0x8] sm:$0xff] %vm54_vm1, %v52_v10 }

</bundles_post_ra>
